<compile_context>
chip_gen: v6e
topology: v6e:2x2x1
jax: 0.10.0
libtpu: 0.0.40
codegen_flags: <defaults>
</compile_context>

<pallas_src>
import functools
import math

import jax
import jax.numpy as jnp
from jax import lax
from jax.experimental import pallas as pl
from jax.experimental.pallas import tpu as pltpu

LN_EPS = 1e-5        # PyTorch nn.LayerNorm default
MASK_VALUE = -1e6    # d2l.masked_softmax fill value


def _pick_tile(n, cap):
    """Largest divisor of n that is <= cap and a multiple of 8 (else n itself)."""
    if n <= cap:
        return n
    t = cap - (cap % 8)
    while t >= 8:
        if n % t == 0:
            return t
        t -= 8
    return n


def _layernorm_epilogue(z, gamma, beta):
    # Single-pass mean / variance: var = E[z^2] - mean^2 (one XLU reduction saved).
    mean = jnp.mean(z, axis=-1, keepdims=True)
    var = jnp.mean(z * z, axis=-1, keepdims=True) - mean * mean
    inv = lax.rsqrt(var + LN_EPS)
    return (z - mean) * inv * gamma + beta


# ---------------------------------------------------------------------------
# Kernel 1: multi-head self-attention (+ valid_lens key masking) with AddNorm1
#           fused into the W_o projection epilogue.
# ---------------------------------------------------------------------------
def _attn_addnorm_kernel(num_heads,
                         vlen_ref,                        # SMEM (B,) int32 (scalar prefetch)
                         xq_ref, xkv_ref,                 # (TQ, H), (S, H)
                         wq_ref, wk_ref, wv_ref, wo_ref,  # (H, H) each, no bias
                         g_ref, b_ref,                    # (1, H)
                         o_ref):                          # (TQ, H)
    b = pl.program_id(0)
    n_valid = vlen_ref[b]

    xq = xq_ref[...].astype(jnp.float32)     # query source AND residual
    xkv = xkv_ref[...].astype(jnp.float32)   # key / value source (full sequence)

    q = jnp.dot(xq, wq_ref[...].astype(jnp.float32), preferred_element_type=jnp.float32)
    k = jnp.dot(xkv, wk_ref[...].astype(jnp.float32), preferred_element_type=jnp.float32)
    v = jnp.dot(xkv, wv_ref[...].astype(jnp.float32), preferred_element_type=jnp.float32)
    wo = wo_ref[...].astype(jnp.float32)

    tq, hdim = xq.shape
    skv = xkv.shape[0]
    d = hdim // num_heads
    scale = 1.0 / math.sqrt(d)

    col = lax.broadcasted_iota(jnp.int32, (tq, skv), 1)
    key_mask = col < n_valid

    # Static per-head loop; concat(heads) @ Wo is expressed as sum_h head_h @ Wo[h*d:(h+1)*d]
    # to avoid an in-kernel concatenate.
    attn_out = jnp.zeros((tq, hdim), jnp.float32)
    for h in range(num_heads):
        lo, hi = h * d, (h + 1) * d
        qh, kh, vh = q[:, lo:hi], k[:, lo:hi], v[:, lo:hi]
        s = lax.dot_general(qh, kh, (((1,), (1,)), ((), ())),
                            preferred_element_type=jnp.float32) * scale
        s = jnp.where(key_mask, s, MASK_VALUE)
        s = s - jnp.max(s, axis=-1, keepdims=True)
        p = jnp.exp(s)
        p = p / jnp.sum(p, axis=-1, keepdims=True)
        # TODO(synk): attention-weight dropout is eval-mode identity here.
        ctx_h = jnp.dot(p, vh, preferred_element_type=jnp.float32)          # (TQ, d)
        attn_out = attn_out + jnp.dot(ctx_h, wo[lo:hi, :],
                                      preferred_element_type=jnp.float32)   # (TQ, H)

    # Fused AddNorm1: LayerNorm(dropout(attn_out) + X), dropout == identity (eval).
    z = attn_out + xq
    out = _layernorm_epilogue(z, g_ref[...].astype(jnp.float32),
                              b_ref[...].astype(jnp.float32))
    o_ref[...] = out.astype(o_ref.dtype)


def mha_addnorm(x, valid_lens, wq, wk, wv, wo, gamma, beta, *, num_heads,
                q_tile_cap=256):
    B, S, H = x.shape
    tq = _pick_tile(S, q_tile_cap)
    gamma2d = gamma.reshape(1, H)
    beta2d = beta.reshape(1, H)
    vlen = valid_lens.astype(jnp.int32)
    kernel = functools.partial(_attn_addnorm_kernel, num_heads)
    return pl.pallas_call(
        kernel,
        out_shape=jax.ShapeDtypeStruct((B, S, H), x.dtype),
        grid_spec=pltpu.PrefetchScalarGridSpec(
            num_scalar_prefetch=1,
            grid=(B, S // tq),
            in_specs=[
                pl.BlockSpec((None, tq, H), lambda b, qs, vl: (b, qs, 0)),  # X (queries/residual)
                pl.BlockSpec((None, S, H), lambda b, qs, vl: (b, 0, 0)),    # X (keys/values)
                pl.BlockSpec((H, H), lambda b, qs, vl: (0, 0)),             # Wq
                pl.BlockSpec((H, H), lambda b, qs, vl: (0, 0)),             # Wk
                pl.BlockSpec((H, H), lambda b, qs, vl: (0, 0)),             # Wv
                pl.BlockSpec((H, H), lambda b, qs, vl: (0, 0)),             # Wo
                pl.BlockSpec((1, H), lambda b, qs, vl: (0, 0)),             # gamma1
                pl.BlockSpec((1, H), lambda b, qs, vl: (0, 0)),             # beta1
            ],
            out_specs=pl.BlockSpec((None, tq, H), lambda b, qs, vl: (b, qs, 0)),
        ),
        compiler_params=pltpu.CompilerParams(
            dimension_semantics=("parallel", "parallel")),
    )(vlen, x, x, wq, wk, wv, wo, gamma2d, beta2d)


# ---------------------------------------------------------------------------
# Kernel 2: PositionWiseFFN (dense1 -> ReLU -> dense2) with AddNorm2 fused into
#           the second GEMM's epilogue. Rows flattened to (B*S, H): lane-dense
#           stores, row-tiled grid.
# ---------------------------------------------------------------------------
def _ffn_addnorm_kernel(y_ref,                 # (TM, H)  FFN input AND residual
                        w1_ref, b1_ref,        # (H, F), (1, F)
                        w2_ref, b2_ref,        # (F, H), (1, H)
                        g_ref, b_ref,          # (1, H)
                        o_ref):                # (TM, H)
    y = y_ref[...].astype(jnp.float32)
    h = jnp.dot(y, w1_ref[...].astype(jnp.float32), preferred_element_type=jnp.float32)
    h = jnp.maximum(h + b1_ref[...].astype(jnp.float32), 0.0)
    z = jnp.dot(h, w2_ref[...].astype(jnp.float32), preferred_element_type=jnp.float32)
    # Fused AddNorm2: LayerNorm(dropout(ffn(Y)) + Y), dropout == identity (eval).
    z = z + b2_ref[...].astype(jnp.float32) + y
    out = _layernorm_epilogue(z, g_ref[...].astype(jnp.float32),
                              b_ref[...].astype(jnp.float32))
    o_ref[...] = out.astype(o_ref.dtype)


def ffn_addnorm(y, w1, b1, w2, b2, gamma, beta, *, row_tile_cap=512):
    B, S, H = y.shape
    F = w1.shape[1]
    rows = B * S
    tm = _pick_tile(rows, row_tile_cap)
    y2d = y.reshape(rows, H)
    out2d = pl.pallas_call(
        _ffn_addnorm_kernel,
        out_shape=jax.ShapeDtypeStruct((rows, H), y.dtype),
        grid_spec=pltpu.PrefetchScalarGridSpec(
            num_scalar_prefetch=0,
            grid=(rows // tm,),
            in_specs=[
                pl.BlockSpec((tm, H), lambda i: (i, 0)),   # Y rows
                pl.BlockSpec((H, F), lambda i: (0, 0)),    # W1
                pl.BlockSpec((1, F), lambda i: (0, 0)),    # b1
                pl.BlockSpec((F, H), lambda i: (0, 0)),    # W2
                pl.BlockSpec((1, H), lambda i: (0, 0)),    # b2
                pl.BlockSpec((1, H), lambda i: (0, 0)),    # gamma2
                pl.BlockSpec((1, H), lambda i: (0, 0)),    # beta2
            ],
            out_specs=pl.BlockSpec((tm, H), lambda i: (i, 0)),
        ),
        compiler_params=pltpu.CompilerParams(
            dimension_semantics=("parallel",)),
    )(y2d, w1, b1.reshape(1, F), w2, b2.reshape(1, H),
      gamma.reshape(1, H), beta.reshape(1, H))
    return out2d.reshape(B, S, H)


def transformer_encoder_block(x, valid_lens, params, *, num_heads):
    y = mha_addnorm(x, valid_lens,
                    params["wq"], params["wk"], params["wv"], params["wo"],
                    params["gamma1"], params["beta1"], num_heads=num_heads)
    return ffn_addnorm(y, params["w1"], params["b1"], params["w2"], params["b2"],
                       params["gamma2"], params["beta2"])


# ---------------------------------------------------------------------------
# Pure-JAX reference (matches d2l MultiHeadAttention + AddNorm + FFN + AddNorm).
# ---------------------------------------------------------------------------
def transformer_encoder_block_ref(x, valid_lens, params, *, num_heads):
    B, S, H = x.shape
    d = H // num_heads

    def split_heads(t):
        return t.reshape(B, S, num_heads, d).transpose(0, 2, 1, 3)

    q = split_heads(x @ params["wq"])
    k = split_heads(x @ params["wk"])
    v = split_heads(x @ params["wv"])
    scores = jnp.einsum("bhqd,bhkd->bhqk", q, k) / math.sqrt(d)
    col = jnp.arange(S)[None, None, None, :]
    mask = col < valid_lens[:, None, None, None]
    scores = jnp.where(mask, scores, MASK_VALUE)
    attn = jax.nn.softmax(scores, axis=-1)
    ctx = jnp.einsum("bhqk,bhkd->bhqd", attn, v)
    ctx = ctx.transpose(0, 2, 1, 3).reshape(B, S, H)
    attn_out = ctx @ params["wo"]

    def layer_norm(z, g, b):
        mean = jnp.mean(z, axis=-1, keepdims=True)
        var = jnp.mean((z - mean) ** 2, axis=-1, keepdims=True)
        return (z - mean) / jnp.sqrt(var + LN_EPS) * g + b

    y = layer_norm(attn_out + x, params["gamma1"], params["beta1"])
    h = jnp.maximum(y @ params["w1"] + params["b1"], 0.0)
    f = h @ params["w2"] + params["b2"]
    return layer_norm(f + y, params["gamma2"], params["beta2"])


if __name__ == "__main__":
    batch, seq, hidden = 2, 8, 32
    num_heads, ffn_hidden = 4, 64

    key = jax.random.PRNGKey(0)
    keys = jax.random.split(key, 8)
    X = jax.random.normal(keys[0], (batch, seq, hidden), dtype=jnp.float32)
    valid_lens = jnp.array([2, 6], dtype=jnp.int32)

    s_h = 1.0 / math.sqrt(hidden)
    s_f = 1.0 / math.sqrt(ffn_hidden)
    params = dict(
        wq=jax.random.normal(keys[1], (hidden, hidden), jnp.float32) * s_h,
        wk=jax.random.normal(keys[2], (hidden, hidden), jnp.float32) * s_h,
        wv=jax.random.normal(keys[3], (hidden, hidden), jnp.float32) * s_h,
        wo=jax.random.normal(keys[4], (hidden, hidden), jnp.float32) * s_h,
        w1=jax.random.normal(keys[5], (hidden, ffn_hidden), jnp.float32) * s_h,
        b1=jax.random.normal(keys[6], (ffn_hidden,), jnp.float32) * 0.1,
        w2=jax.random.normal(keys[7], (ffn_hidden, hidden), jnp.float32) * s_f,
        b2=jnp.zeros((hidden,), jnp.float32),
        gamma1=jnp.ones((hidden,), jnp.float32),   # nn.LayerNorm default init
        beta1=jnp.zeros((hidden,), jnp.float32),
        gamma2=jnp.ones((hidden,), jnp.float32),
        beta2=jnp.zeros((hidden,), jnp.float32),
    )

    out = transformer_encoder_block(X, valid_lens, params, num_heads=num_heads)
    jax.block_until_ready(out)

    # f32-accurate reference matmuls so the comparison is apples-to-apples.
    with jax.default_matmul_precision("float32"):
        ref = transformer_encoder_block_ref(X, valid_lens, params, num_heads=num_heads)
        ref = jax.block_until_ready(ref)

    assert out.shape == (batch, seq, hidden)
    max_diff = float(jnp.max(jnp.abs(out - ref)))
    assert jnp.allclose(out, ref, atol=1e-3, rtol=1e-3), f"mismatch vs reference (max diff {max_diff})"
    print("KERNEL_OK")
</pallas_src>

<mosaic_0001>
module attributes {stable_mosaic.version = 11 : i64} {
  func.func @_attn_addnorm_kernel(%arg0: i32, %arg1: i32, %arg2: memref<2xi32, #tpu.memory_space<smem>>, %arg3: memref<1x8x32xf32, #tpu.memory_space<vmem>>, %arg4: memref<1x8x32xf32, #tpu.memory_space<vmem>>, %arg5: memref<32x32xf32, #tpu.memory_space<vmem>>, %arg6: memref<32x32xf32, #tpu.memory_space<vmem>>, %arg7: memref<32x32xf32, #tpu.memory_space<vmem>>, %arg8: memref<32x32xf32, #tpu.memory_space<vmem>>, %arg9: memref<1x32xf32, #tpu.memory_space<vmem>>, %arg10: memref<1x32xf32, #tpu.memory_space<vmem>>, %arg11: memref<1x8x32xf32, #tpu.memory_space<vmem>>) attributes {dimension_semantics = [#tpu.dimension_semantics<parallel>, #tpu.dimension_semantics<parallel>], iteration_bounds = array<i64: 2, 1>, scalar_prefetch = 1 : i64, scratch_operands = 0 : i64, tpu.core_type = #tpu.core_type<tc>, window_params = [{transform_indices = @transform_0, window_bounds = array<i64: 1, 8, 32>}, {transform_indices = @transform_1, window_bounds = array<i64: 1, 8, 32>}, {pipeline_mode = #tpu.pipeline_mode<synchronous>, transform_indices = @transform_2, window_bounds = array<i64: 32, 32>}, {pipeline_mode = #tpu.pipeline_mode<synchronous>, transform_indices = @transform_3, window_bounds = array<i64: 32, 32>}, {pipeline_mode = #tpu.pipeline_mode<synchronous>, transform_indices = @transform_4, window_bounds = array<i64: 32, 32>}, {pipeline_mode = #tpu.pipeline_mode<synchronous>, transform_indices = @transform_5, window_bounds = array<i64: 32, 32>}, {pipeline_mode = #tpu.pipeline_mode<synchronous>, transform_indices = @transform_6, window_bounds = array<i64: 1, 32>}, {pipeline_mode = #tpu.pipeline_mode<synchronous>, transform_indices = @transform_7, window_bounds = array<i64: 1, 32>}, {transform_indices = @transform_8, window_bounds = array<i64: 1, 8, 32>}]} {
    %0 = arith.index_cast %arg0 : i32 to index
    %1 = memref.load %arg2[%0] : memref<2xi32, #tpu.memory_space<smem>>
    %c0 = arith.constant 0 : index
    %c0_0 = arith.constant 0 : index
    %c0_1 = arith.constant 0 : index
    %2 = vector.load %arg3[%c0, %c0_0, %c0_1] : memref<1x8x32xf32, #tpu.memory_space<vmem>>, vector<1x8x32xf32>
    %3 = vector.shape_cast %2 : vector<1x8x32xf32> to vector<8x32xf32>
    %c0_2 = arith.constant 0 : index
    %c0_3 = arith.constant 0 : index
    %c0_4 = arith.constant 0 : index
    %4 = vector.load %arg4[%c0_2, %c0_3, %c0_4] : memref<1x8x32xf32, #tpu.memory_space<vmem>>, vector<1x8x32xf32>
    %5 = vector.shape_cast %4 : vector<1x8x32xf32> to vector<8x32xf32>
    %c0_5 = arith.constant 0 : index
    %c0_6 = arith.constant 0 : index
    %6 = vector.load %arg5[%c0_5, %c0_6] : memref<32x32xf32, #tpu.memory_space<vmem>>, vector<32x32xf32>
    %cst = arith.constant dense<0.000000e+00> : vector<8x32xf32>
    %7 = tpu.matmul %3, %6, %cst {dimension_numbers = #tpu.dot_dimension_numbers<[1], [0], [0], [1], [0, 0, 1, 1], [], []>} : vector<8x32xf32>, vector<32x32xf32>, vector<8x32xf32> -> vector<8x32xf32>
    %c0_7 = arith.constant 0 : index
    %c0_8 = arith.constant 0 : index
    %8 = vector.load %arg6[%c0_7, %c0_8] : memref<32x32xf32, #tpu.memory_space<vmem>>, vector<32x32xf32>
    %cst_9 = arith.constant dense<0.000000e+00> : vector<8x32xf32>
    %9 = tpu.matmul %5, %8, %cst_9 {dimension_numbers = #tpu.dot_dimension_numbers<[1], [0], [0], [1], [0, 0, 1, 1], [], []>} : vector<8x32xf32>, vector<32x32xf32>, vector<8x32xf32> -> vector<8x32xf32>
    %c0_10 = arith.constant 0 : index
    %c0_11 = arith.constant 0 : index
    %10 = vector.load %arg7[%c0_10, %c0_11] : memref<32x32xf32, #tpu.memory_space<vmem>>, vector<32x32xf32>
    %cst_12 = arith.constant dense<0.000000e+00> : vector<8x32xf32>
    %11 = tpu.matmul %5, %10, %cst_12 {dimension_numbers = #tpu.dot_dimension_numbers<[1], [0], [0], [1], [0, 0, 1, 1], [], []>} : vector<8x32xf32>, vector<32x32xf32>, vector<8x32xf32> -> vector<8x32xf32>
    %c0_13 = arith.constant 0 : index
    %c0_14 = arith.constant 0 : index
    %12 = vector.load %arg8[%c0_13, %c0_14] : memref<32x32xf32, #tpu.memory_space<vmem>>, vector<32x32xf32>
    %13 = tpu.iota {dimensions = array<i32: 1>} : vector<8x8xi32>
    %14 = vector.broadcast %1 : i32 to vector<8x8xi32>
    %15 = arith.cmpi slt, %13, %14 : vector<8x8xi32>
    %cst_15 = arith.constant 0.000000e+00 : f32
    %16 = vector.broadcast %cst_15 : f32 to vector<8x32xf32>
    %17 = vector.extract_strided_slice %7 {offsets = [0, 0], sizes = [8, 8], strides = [1, 1]} : vector<8x32xf32> to vector<8x8xf32>
    %18 = vector.extract_strided_slice %9 {offsets = [0, 0], sizes = [8, 8], strides = [1, 1]} : vector<8x32xf32> to vector<8x8xf32>
    %19 = vector.extract_strided_slice %11 {offsets = [0, 0], sizes = [8, 8], strides = [1, 1]} : vector<8x32xf32> to vector<8x8xf32>
    %cst_16 = arith.constant dense<0.000000e+00> : vector<8x8xf32>
    %20 = tpu.matmul %17, %18, %cst_16 {dimension_numbers = #tpu.dot_dimension_numbers<[1], [1], [0], [0], [0, 0, 1, 0], [], []>} : vector<8x8xf32>, vector<8x8xf32>, vector<8x8xf32> -> vector<8x8xf32>
    %cst_17 = arith.constant 0.353553385 : f32
    %21 = vector.broadcast %cst_17 : f32 to vector<8x8xf32>
    %22 = arith.mulf %20, %21 : vector<8x8xf32>
    %cst_18 = arith.constant -1.000000e+06 : f32
    %23 = vector.broadcast %cst_18 : f32 to vector<8x8xf32>
    %24 = arith.select %15, %22, %23 : vector<8x8xi1>, vector<8x8xf32>
    %cst_19 = arith.constant dense<0xFF800000> : vector<8xf32>
    %25 = vector.multi_reduction <maximumf>, %24, %cst_19 [1] : vector<8x8xf32> to vector<8xf32>
    %26 = vector.shape_cast %25 : vector<8xf32> to vector<8x1xf32>
    %27 = vector.broadcast %26 : vector<8x1xf32> to vector<8x8xf32>
    %28 = arith.subf %24, %27 : vector<8x8xf32>
    %29 = math.exp %28 : vector<8x8xf32>
    %cst_20 = arith.constant dense<0.000000e+00> : vector<8xf32>
    %30 = vector.multi_reduction <add>, %29, %cst_20 [1] : vector<8x8xf32> to vector<8xf32>
    %31 = vector.shape_cast %30 : vector<8xf32> to vector<8x1xf32>
    %32 = vector.broadcast %31 : vector<8x1xf32> to vector<8x8xf32>
    %33 = arith.divf %29, %32 : vector<8x8xf32>
    %cst_21 = arith.constant dense<0.000000e+00> : vector<8x8xf32>
    %34 = tpu.matmul %33, %19, %cst_21 {dimension_numbers = #tpu.dot_dimension_numbers<[1], [0], [0], [1], [0, 0, 1, 1], [], []>} : vector<8x8xf32>, vector<8x8xf32>, vector<8x8xf32> -> vector<8x8xf32>
    %35 = vector.extract_strided_slice %12 {offsets = [0, 0], sizes = [8, 32], strides = [1, 1]} : vector<32x32xf32> to vector<8x32xf32>
    %cst_22 = arith.constant dense<0.000000e+00> : vector<8x32xf32>
    %36 = tpu.matmul %34, %35, %cst_22 {dimension_numbers = #tpu.dot_dimension_numbers<[1], [0], [0], [1], [0, 0, 1, 1], [], []>} : vector<8x8xf32>, vector<8x32xf32>, vector<8x32xf32> -> vector<8x32xf32>
    %37 = arith.addf %16, %36 : vector<8x32xf32>
    %38 = vector.extract_strided_slice %7 {offsets = [0, 8], sizes = [8, 8], strides = [1, 1]} : vector<8x32xf32> to vector<8x8xf32>
    %39 = vector.extract_strided_slice %9 {offsets = [0, 8], sizes = [8, 8], strides = [1, 1]} : vector<8x32xf32> to vector<8x8xf32>
    %40 = vector.extract_strided_slice %11 {offsets = [0, 8], sizes = [8, 8], strides = [1, 1]} : vector<8x32xf32> to vector<8x8xf32>
    %cst_23 = arith.constant dense<0.000000e+00> : vector<8x8xf32>
    %41 = tpu.matmul %38, %39, %cst_23 {dimension_numbers = #tpu.dot_dimension_numbers<[1], [1], [0], [0], [0, 0, 1, 0], [], []>} : vector<8x8xf32>, vector<8x8xf32>, vector<8x8xf32> -> vector<8x8xf32>
    %cst_24 = arith.constant 0.353553385 : f32
    %42 = vector.broadcast %cst_24 : f32 to vector<8x8xf32>
    %43 = arith.mulf %41, %42 : vector<8x8xf32>
    %cst_25 = arith.constant -1.000000e+06 : f32
    %44 = vector.broadcast %cst_25 : f32 to vector<8x8xf32>
    %45 = arith.select %15, %43, %44 : vector<8x8xi1>, vector<8x8xf32>
    %cst_26 = arith.constant dense<0xFF800000> : vector<8xf32>
    %46 = vector.multi_reduction <maximumf>, %45, %cst_26 [1] : vector<8x8xf32> to vector<8xf32>
    %47 = vector.shape_cast %46 : vector<8xf32> to vector<8x1xf32>
    %48 = vector.broadcast %47 : vector<8x1xf32> to vector<8x8xf32>
    %49 = arith.subf %45, %48 : vector<8x8xf32>
    %50 = math.exp %49 : vector<8x8xf32>
    %cst_27 = arith.constant dense<0.000000e+00> : vector<8xf32>
    %51 = vector.multi_reduction <add>, %50, %cst_27 [1] : vector<8x8xf32> to vector<8xf32>
    %52 = vector.shape_cast %51 : vector<8xf32> to vector<8x1xf32>
    %53 = vector.broadcast %52 : vector<8x1xf32> to vector<8x8xf32>
    %54 = arith.divf %50, %53 : vector<8x8xf32>
    %cst_28 = arith.constant dense<0.000000e+00> : vector<8x8xf32>
    %55 = tpu.matmul %54, %40, %cst_28 {dimension_numbers = #tpu.dot_dimension_numbers<[1], [0], [0], [1], [0, 0, 1, 1], [], []>} : vector<8x8xf32>, vector<8x8xf32>, vector<8x8xf32> -> vector<8x8xf32>
    %56 = vector.extract_strided_slice %12 {offsets = [8, 0], sizes = [8, 32], strides = [1, 1]} : vector<32x32xf32> to vector<8x32xf32>
    %cst_29 = arith.constant dense<0.000000e+00> : vector<8x32xf32>
    %57 = tpu.matmul %55, %56, %cst_29 {dimension_numbers = #tpu.dot_dimension_numbers<[1], [0], [0], [1], [0, 0, 1, 1], [], []>} : vector<8x8xf32>, vector<8x32xf32>, vector<8x32xf32> -> vector<8x32xf32>
    %58 = arith.addf %37, %57 : vector<8x32xf32>
    %59 = vector.extract_strided_slice %7 {offsets = [0, 16], sizes = [8, 8], strides = [1, 1]} : vector<8x32xf32> to vector<8x8xf32>
    %60 = vector.extract_strided_slice %9 {offsets = [0, 16], sizes = [8, 8], strides = [1, 1]} : vector<8x32xf32> to vector<8x8xf32>
    %61 = vector.extract_strided_slice %11 {offsets = [0, 16], sizes = [8, 8], strides = [1, 1]} : vector<8x32xf32> to vector<8x8xf32>
    %cst_30 = arith.constant dense<0.000000e+00> : vector<8x8xf32>
    %62 = tpu.matmul %59, %60, %cst_30 {dimension_numbers = #tpu.dot_dimension_numbers<[1], [1], [0], [0], [0, 0, 1, 0], [], []>} : vector<8x8xf32>, vector<8x8xf32>, vector<8x8xf32> -> vector<8x8xf32>
    %cst_31 = arith.constant 0.353553385 : f32
    %63 = vector.broadcast %cst_31 : f32 to vector<8x8xf32>
    %64 = arith.mulf %62, %63 : vector<8x8xf32>
    %cst_32 = arith.constant -1.000000e+06 : f32
    %65 = vector.broadcast %cst_32 : f32 to vector<8x8xf32>
    %66 = arith.select %15, %64, %65 : vector<8x8xi1>, vector<8x8xf32>
    %cst_33 = arith.constant dense<0xFF800000> : vector<8xf32>
    %67 = vector.multi_reduction <maximumf>, %66, %cst_33 [1] : vector<8x8xf32> to vector<8xf32>
    %68 = vector.shape_cast %67 : vector<8xf32> to vector<8x1xf32>
    %69 = vector.broadcast %68 : vector<8x1xf32> to vector<8x8xf32>
    %70 = arith.subf %66, %69 : vector<8x8xf32>
    %71 = math.exp %70 : vector<8x8xf32>
    %cst_34 = arith.constant dense<0.000000e+00> : vector<8xf32>
    %72 = vector.multi_reduction <add>, %71, %cst_34 [1] : vector<8x8xf32> to vector<8xf32>
    %73 = vector.shape_cast %72 : vector<8xf32> to vector<8x1xf32>
    %74 = vector.broadcast %73 : vector<8x1xf32> to vector<8x8xf32>
    %75 = arith.divf %71, %74 : vector<8x8xf32>
    %cst_35 = arith.constant dense<0.000000e+00> : vector<8x8xf32>
    %76 = tpu.matmul %75, %61, %cst_35 {dimension_numbers = #tpu.dot_dimension_numbers<[1], [0], [0], [1], [0, 0, 1, 1], [], []>} : vector<8x8xf32>, vector<8x8xf32>, vector<8x8xf32> -> vector<8x8xf32>
    %77 = vector.extract_strided_slice %12 {offsets = [16, 0], sizes = [8, 32], strides = [1, 1]} : vector<32x32xf32> to vector<8x32xf32>
    %cst_36 = arith.constant dense<0.000000e+00> : vector<8x32xf32>
    %78 = tpu.matmul %76, %77, %cst_36 {dimension_numbers = #tpu.dot_dimension_numbers<[1], [0], [0], [1], [0, 0, 1, 1], [], []>} : vector<8x8xf32>, vector<8x32xf32>, vector<8x32xf32> -> vector<8x32xf32>
    %79 = arith.addf %58, %78 : vector<8x32xf32>
    %80 = vector.extract_strided_slice %7 {offsets = [0, 24], sizes = [8, 8], strides = [1, 1]} : vector<8x32xf32> to vector<8x8xf32>
    %81 = vector.extract_strided_slice %9 {offsets = [0, 24], sizes = [8, 8], strides = [1, 1]} : vector<8x32xf32> to vector<8x8xf32>
    %82 = vector.extract_strided_slice %11 {offsets = [0, 24], sizes = [8, 8], strides = [1, 1]} : vector<8x32xf32> to vector<8x8xf32>
    %cst_37 = arith.constant dense<0.000000e+00> : vector<8x8xf32>
    %83 = tpu.matmul %80, %81, %cst_37 {dimension_numbers = #tpu.dot_dimension_numbers<[1], [1], [0], [0], [0, 0, 1, 0], [], []>} : vector<8x8xf32>, vector<8x8xf32>, vector<8x8xf32> -> vector<8x8xf32>
    %cst_38 = arith.constant 0.353553385 : f32
    %84 = vector.broadcast %cst_38 : f32 to vector<8x8xf32>
    %85 = arith.mulf %83, %84 : vector<8x8xf32>
    %cst_39 = arith.constant -1.000000e+06 : f32
    %86 = vector.broadcast %cst_39 : f32 to vector<8x8xf32>
    %87 = arith.select %15, %85, %86 : vector<8x8xi1>, vector<8x8xf32>
    %cst_40 = arith.constant dense<0xFF800000> : vector<8xf32>
    %88 = vector.multi_reduction <maximumf>, %87, %cst_40 [1] : vector<8x8xf32> to vector<8xf32>
    %89 = vector.shape_cast %88 : vector<8xf32> to vector<8x1xf32>
    %90 = vector.broadcast %89 : vector<8x1xf32> to vector<8x8xf32>
    %91 = arith.subf %87, %90 : vector<8x8xf32>
    %92 = math.exp %91 : vector<8x8xf32>
    %cst_41 = arith.constant dense<0.000000e+00> : vector<8xf32>
    %93 = vector.multi_reduction <add>, %92, %cst_41 [1] : vector<8x8xf32> to vector<8xf32>
    %94 = vector.shape_cast %93 : vector<8xf32> to vector<8x1xf32>
    %95 = vector.broadcast %94 : vector<8x1xf32> to vector<8x8xf32>
    %96 = arith.divf %92, %95 : vector<8x8xf32>
    %cst_42 = arith.constant dense<0.000000e+00> : vector<8x8xf32>
    %97 = tpu.matmul %96, %82, %cst_42 {dimension_numbers = #tpu.dot_dimension_numbers<[1], [0], [0], [1], [0, 0, 1, 1], [], []>} : vector<8x8xf32>, vector<8x8xf32>, vector<8x8xf32> -> vector<8x8xf32>
    %98 = vector.extract_strided_slice %12 {offsets = [24, 0], sizes = [8, 32], strides = [1, 1]} : vector<32x32xf32> to vector<8x32xf32>
    %cst_43 = arith.constant dense<0.000000e+00> : vector<8x32xf32>
    %99 = tpu.matmul %97, %98, %cst_43 {dimension_numbers = #tpu.dot_dimension_numbers<[1], [0], [0], [1], [0, 0, 1, 1], [], []>} : vector<8x8xf32>, vector<8x32xf32>, vector<8x32xf32> -> vector<8x32xf32>
    %100 = arith.addf %79, %99 : vector<8x32xf32>
    %101 = arith.addf %100, %3 : vector<8x32xf32>
    %c0_44 = arith.constant 0 : index
    %c0_45 = arith.constant 0 : index
    %102 = vector.load %arg9[%c0_44, %c0_45] : memref<1x32xf32, #tpu.memory_space<vmem>>, vector<1x32xf32>
    %c0_46 = arith.constant 0 : index
    %c0_47 = arith.constant 0 : index
    %103 = vector.load %arg10[%c0_46, %c0_47] : memref<1x32xf32, #tpu.memory_space<vmem>>, vector<1x32xf32>
    %cst_48 = arith.constant dense<0.000000e+00> : vector<8xf32>
    %104 = vector.multi_reduction <add>, %101, %cst_48 [1] : vector<8x32xf32> to vector<8xf32>
    %105 = vector.shape_cast %104 : vector<8xf32> to vector<8x1xf32>
    %cst_49 = arith.constant 3.200000e+01 : f32
    %106 = vector.broadcast %cst_49 : f32 to vector<8x1xf32>
    %107 = arith.divf %105, %106 : vector<8x1xf32>
    %108 = arith.mulf %101, %101 : vector<8x32xf32>
    %cst_50 = arith.constant dense<0.000000e+00> : vector<8xf32>
    %109 = vector.multi_reduction <add>, %108, %cst_50 [1] : vector<8x32xf32> to vector<8xf32>
    %110 = vector.shape_cast %109 : vector<8xf32> to vector<8x1xf32>
    %cst_51 = arith.constant 3.200000e+01 : f32
    %111 = vector.broadcast %cst_51 : f32 to vector<8x1xf32>
    %112 = arith.divf %110, %111 : vector<8x1xf32>
    %113 = arith.mulf %107, %107 : vector<8x1xf32>
    %114 = arith.subf %112, %113 : vector<8x1xf32>
    %cst_52 = arith.constant 9.99999974E-6 : f32
    %115 = vector.broadcast %cst_52 : f32 to vector<8x1xf32>
    %116 = arith.addf %114, %115 : vector<8x1xf32>
    %117 = math.rsqrt %116 : vector<8x1xf32>
    %118 = vector.broadcast %107 : vector<8x1xf32> to vector<8x32xf32>
    %119 = arith.subf %101, %118 : vector<8x32xf32>
    %120 = vector.broadcast %117 : vector<8x1xf32> to vector<8x32xf32>
    %121 = arith.mulf %119, %120 : vector<8x32xf32>
    %122 = vector.broadcast %102 : vector<1x32xf32> to vector<8x32xf32>
    %123 = arith.mulf %121, %122 : vector<8x32xf32>
    %124 = vector.broadcast %103 : vector<1x32xf32> to vector<8x32xf32>
    %125 = arith.addf %123, %124 : vector<8x32xf32>
    %c0_53 = arith.constant 0 : index
    %c0_54 = arith.constant 0 : index
    %c0_55 = arith.constant 0 : index
    %126 = vector.load %arg11[%c0_53, %c0_54, %c0_55] : memref<1x8x32xf32, #tpu.memory_space<vmem>>, vector<1x8x32xf32>
    %127 = vector.shape_cast %126 : vector<1x8x32xf32> to vector<8x32xf32>
    %128 = vector.shape_cast %125 : vector<8x32xf32> to vector<1x8x32xf32>
    tpu.vector_store %arg11[%c0_53, %c0_54, %c0_55], %128 {strides = array<i32>} : memref<1x8x32xf32, #tpu.memory_space<vmem>>, vector<1x8x32xf32>,
    return
  }
  func.func @transform_0(%arg0: i32, %arg1: i32, %arg2: memref<2xi32, #tpu.memory_space<smem>>) -> (i32, i32, i32) {
    %c0_i32 = arith.constant 0 : i32
    %c0_i32_0 = arith.constant 0 : i32
    return %arg0, %arg1, %c0_i32 : i32, i32, i32
  }
  func.func @transform_1(%arg0: i32, %arg1: i32, %arg2: memref<2xi32, #tpu.memory_space<smem>>) -> (i32, i32, i32) {
    %c0_i32 = arith.constant 0 : i32
    %c0_i32_0 = arith.constant 0 : i32
    %c0_i32_1 = arith.constant 0 : i32
    return %arg0, %c0_i32, %c0_i32_0 : i32, i32, i32
  }
  func.func @transform_2(%arg0: i32, %arg1: i32, %arg2: memref<2xi32, #tpu.memory_space<smem>>) -> (i32, i32) {
    %c0_i32 = arith.constant 0 : i32
    %c0_i32_0 = arith.constant 0 : i32
    %c0_i32_1 = arith.constant 0 : i32
    return %c0_i32, %c0_i32_0 : i32, i32
  }
  func.func @transform_3(%arg0: i32, %arg1: i32, %arg2: memref<2xi32, #tpu.memory_space<smem>>) -> (i32, i32) {
    %c0_i32 = arith.constant 0 : i32
    %c0_i32_0 = arith.constant 0 : i32
    %c0_i32_1 = arith.constant 0 : i32
    return %c0_i32, %c0_i32_0 : i32, i32
  }
  func.func @transform_4(%arg0: i32, %arg1: i32, %arg2: memref<2xi32, #tpu.memory_space<smem>>) -> (i32, i32) {
    %c0_i32 = arith.constant 0 : i32
    %c0_i32_0 = arith.constant 0 : i32
    %c0_i32_1 = arith.constant 0 : i32
    return %c0_i32, %c0_i32_0 : i32, i32
  }
  func.func @transform_5(%arg0: i32, %arg1: i32, %arg2: memref<2xi32, #tpu.memory_space<smem>>) -> (i32, i32) {
    %c0_i32 = arith.constant 0 : i32
    %c0_i32_0 = arith.constant 0 : i32
    %c0_i32_1 = arith.constant 0 : i32
    return %c0_i32, %c0_i32_0 : i32, i32
  }
  func.func @transform_6(%arg0: i32, %arg1: i32, %arg2: memref<2xi32, #tpu.memory_space<smem>>) -> (i32, i32) {
    %c0_i32 = arith.constant 0 : i32
    %c0_i32_0 = arith.constant 0 : i32
    %c0_i32_1 = arith.constant 0 : i32
    return %c0_i32, %c0_i32_0 : i32, i32
  }
  func.func @transform_7(%arg0: i32, %arg1: i32, %arg2: memref<2xi32, #tpu.memory_space<smem>>) -> (i32, i32) {
    %c0_i32 = arith.constant 0 : i32
    %c0_i32_0 = arith.constant 0 : i32
    %c0_i32_1 = arith.constant 0 : i32
    return %c0_i32, %c0_i32_0 : i32, i32
  }
  func.func @transform_8(%arg0: i32, %arg1: i32, %arg2: memref<2xi32, #tpu.memory_space<smem>>) -> (i32, i32, i32) {
    %c0_i32 = arith.constant 0 : i32
    %c0_i32_0 = arith.constant 0 : i32
    return %arg0, %arg1, %c0_i32 : i32, i32, i32
  }
}

</mosaic_0001>

<bundles_post_ra>
// kernel: tpu_custom_call.1
= control target key start
LH: loop header
LB: loop body
LE: loop exit
PB: predicated region body
PF: predicated region fallthrough
CT: control target
= control target key end

     0   :  { %s2406_s30 = smov [#allocation3]   ;;  %s2842_s0 = inlined_call_operand.hbm [shape: s32[2], index: 0, kind: input, shape index: {}]   ;;  %s2843_s1 = inlined_call_operand.hbm [shape: f32[2,8,32], index: 1, kind: input, shape index: {}]   ;;  %s2844_s2 = inlined_call_operand.hbm [shape: f32[2,8,32], index: 2, kind: input, shape index: {}]   ;;  %s2845_s3 = inlined_call_operand.hbm [shape: f32[32,32], index: 3, kind: input, shape index: {}]   ;;  %s2846_s4 = inlined_call_operand.hbm [shape: f32[32,32], index: 4, kind: input, shape index: {}]   ;;  %s2847_s5 = inlined_call_operand.hbm [shape: f32[32,32], index: 5, kind: input, shape index: {}]   ;;  %s2848_s6 = inlined_call_operand.hbm [shape: f32[32,32], index: 6, kind: input, shape index: {}]   ;;  %s2849_s7 = inlined_call_operand.vmem [shape: f32[1,32], index: 7, kind: input, shape index: {}]   ;;  %s2850_s8 = inlined_call_operand.vmem [shape: f32[1,32], index: 8, kind: input, shape index: {}]   ;;  %s2851_s9 = inlined_call_operand.hbm [shape: f32[2,8,32], index: 9, kind: output, shape index: {}]  }
   0x1   :  { %2854 = sst [smem:[#allocation24_spill]] %s2843_s1 }
   0x2   :  { %2855 = sst [smem:[#allocation25_spill]] %s2845_s3 }
   0x3   :  { %2856 = sst [smem:[#allocation26_spill]] %s2846_s4 }
   0x4   :  { %2857 = sst [smem:[#allocation27_spill]] %s2847_s5 }
   0x5   :  { %2858 = sst [smem:[#allocation28_spill]] %s2848_s6 }
   0x6   :  { %15 = dma.hbm_to_smem %s2842_s0, 16, %s2406_s30, [#allocation2] }
   0x7   :  { %2356 = dma.done.wait [#allocation2], 16 }
   0x8   :  { %2357 = vsyncadd [#allocation2], 4294967280 }
   0x9   :  { %17 = sfence }
   0xa   :  { %18 = vsyncpa [#allocation5], 0 }
   0xb   :  { %20 = vsyncpa [#allocation5 + $0x1], 0 }
   0xc   :  { %21 = vsyncpa [#allocation8], 0 }
   0xd   :  { %23 = vsyncpa [#allocation8 + $0x1], 0 }
   0xe   :  { %24 = vsyncpa [#allocation11], 0 }
   0xf   :  { %25 = vsyncpa [#allocation14], 0 }
  0x10   :  { %26 = vsyncpa [#allocation6], 0 }
  0x11   :  { %28 = vsyncpa [#allocation6 + $0x1], 0  ;;  %s2474_s12 = smov 0   ;;  %s2476_s13 = smov 0  }
  0x12   :  { %s2478_s14 = smov 0   ;;  %s2480_s15 = smov 0  }
  0x13   :  { %s2482_s0 = smov 0   ;;  %s2484_s16 = smov 0  }
  0x14 LB: > { %s2505_s17 = sadd.s32 4294967295, %s2404_s16   ;;  %p1829_p0 = scmp.ge.s32.totalorder %s2404_s16, 1  ;;  %s2404_s16 = sphi %s2484_s16, %s34_s16   ;;  %s2400_s0 = sphi %s2482_s0, %s2886_s0   ;;  %s2396_s15 = sphi %s2480_s15, %s2885_s15   ;;  %s2392_s14 = sphi %s2478_s14, %s2884_s14   ;;  %s2388_s13 = sphi %s2476_s13, %s2883_s13   ;;  %s2384_s12 = sphi %s2474_s12, %s2882_s12  }
  0x15   : > { %p2853_p1 = scmp.eq.s32.totalorder %s2505_s17, 0  ;;  %p259_p2 = scmp.lt.s32.totalorder %s2404_s16, 3 }
  0x16   : > { %s2407_s19 = smov [#allocation9]   ;;  %s2408_s22 = smov [#allocation10]  }
  0x17   : > { %p2510_p3 = pnand %p1829_p0, %p259_p2  ;;  %s271_s20 = sshll.u32 %s2407_s19, 4  ;;  %s272_s20 = int_to_ptr.vmem [resolvable:$true] %s271_s20 }
  0x18   : > { %s284_s23 = sshll.u32 %s2408_s22, 4  ;;  %s2409_s24 = smov [#allocation12]   ;;  %s285_s23 = int_to_ptr.vmem [resolvable:$true] %s284_s23 }
  0x19   : > { %p2026_p4 = pneg %p2510_p3  ;;  %s297_s25 = sshll.u32 %s2409_s24, 4  ;;  %s298_s25 = int_to_ptr.vmem [resolvable:$true] %s297_s25 }
  0x1a   : > { %s2157_s26 = scalar_lea.vmem %s272_s20, 512  ;;  %p2165_p11 = scmp.lt.s32.totalorder %s272_s20, %s272_s20 }
  0x1b   : > { %p2519_p6 = pnand %p2026_p4, %p2853_p1  ;;  %p2158_p8 = scmp.ne.s32.totalorder %s272_s20, %s2157_s26 }
  0x1c   : > { %p2166_p12 = scmp.lt.s32.totalorder %s2157_s26, %s2157_s26 }
  0x1d   : > { %p2148_p7 = pneg %p2519_p6 }
  0x1e   : > { %p2167_p13 = por %p2166_p12, %p2165_p11 }
  0x1f   : > { %p2160_p9 = pnand %p2158_p8, %p2148_p7 }
  0x21   : > { %p2161_p10 = pneg %p2160_p9 }
  0x23   : > { %p2168_p0 = pnand %p2167_p13, %p2161_p10 }
  0x25   : > { %2171 = shalt.err (!%p2168_p0)
}
  0x26   : > { %s2410_s27 = smov 128   ;;  %s2411_s28 = smov 8  }
  0x27   : > { %s2861_s3 = sld [smem:[#allocation25_spill]]  ;;  %s2183_s10 = scalar_lea.vmem %s285_s23, 512 }
  0x28   : > { %p2184_p2 = scmp.ne.s32.totalorder %s285_s23, %s2183_s10  ;;  %p2191_p9 = scmp.lt.s32.totalorder %s285_s23, %s285_s23 }
  0x29   : > { %p2192_p10 = scmp.lt.s32.totalorder %s2183_s10, %s2183_s10 }
  0x2a   : > { %p2186_p4 = pnand %p2184_p2, %p2148_p7 }
  0x2b   : > { %p2193_p11 = por %p2192_p10, %p2191_p9 }
  0x2c   : > { %p2187_p8 = pneg %p2186_p4 }
  0x2d   : > { %2029 = dma.hbm_to_vmem [thread:$0]  (!%p2519_p6), %s2861_s3, 512, %s272_s20, [#allocation8], %s2410_s27, %s2410_s27, %s2411_s28  }
  0x2e   : > { %p2194_p12 = pnand %p2193_p11, %p2187_p8 }
  0x30   : > { %2197 = shalt.err (!%p2194_p12)
}
  0x31   : > { %s2862_s4 = sld [smem:[#allocation26_spill]]  ;;  %s2209_s20 = scalar_lea.vmem %s298_s25, 512 }
  0x32   : > { %p2210_p13 = scmp.ne.s32.totalorder %s298_s25, %s2209_s20  ;;  %p2217_p4 = scmp.lt.s32.totalorder %s298_s25, %s298_s25 }
  0x33   : > { %p2218_p8 = scmp.lt.s32.totalorder %s2209_s20, %s2209_s20 }
  0x34   : > { %p2212_p0 = pnand %p2210_p13, %p2148_p7 }
  0x35   : > { %p2219_p9 = por %p2218_p8, %p2217_p4 }
  0x36   : > { %p2213_p2 = pneg %p2212_p0 }
  0x37   : > { %2032 = dma.hbm_to_vmem [thread:$0]  (!%p2519_p6), %s2862_s4, 512, %s285_s23, [#allocation11], %s2410_s27, %s2410_s27, %s2411_s28  }
  0x38   : > { %p2220_p10 = pnand %p2219_p9, %p2213_p2 }
  0x3a   : > { %2223 = shalt.err (!%p2220_p10)
}
  0x3b   : > { %s2863_s5 = sld [smem:[#allocation27_spill]]  ;;  %s2412_s23 = smov [#allocation13]  }
  0x3c   : > { %s310_s26 = sshll.u32 %s2412_s23, 4  ;;  %s311_s26 = int_to_ptr.vmem [resolvable:$true] %s310_s26 }
  0x3d   : > { %s2235_s29 = scalar_lea.vmem %s311_s26, 512  ;;  %p2243_p0 = scmp.lt.s32.totalorder %s311_s26, %s311_s26 }
  0x3e   : > { %p2236_p11 = scmp.ne.s32.totalorder %s311_s26, %s2235_s29  ;;  %p2244_p2 = scmp.lt.s32.totalorder %s2235_s29, %s2235_s29 }
  0x40   : > { %p2238_p12 = pnand %p2236_p11, %p2148_p7  ;;  %p2245_p4 = por %p2244_p2, %p2243_p0 }
  0x41   : > { %2035 = dma.hbm_to_vmem [thread:$0]  (!%p2519_p6), %s2863_s5, 512, %s298_s25, [#allocation11], %s2410_s27, %s2410_s27, %s2411_s28  }
  0x42   : > { %p2239_p13 = pneg %p2238_p12 }
  0x44   : > { %p2246_p8 = pnand %p2245_p4, %p2239_p13 }
  0x46   : > { %2249 = shalt.err (!%p2246_p8)
}
  0x47   : > { %s2864_s6 = sld [smem:[#allocation28_spill]]  ;;  %s1828_s21 = sadd.s32 4294967294, %s2404_s16  }
  0x48   : > { %s46_s10 = sadd.s32 1, %s2400_s0  ;;  %s55_s11 = sadd.s32 1, %s2392_s14 }
  0x49   : > { %p48_p7 = scmp.ge.s32.totalorder %s46_s10, 2  ;;  %p62_p9 = scmp.ne.s32.totalorder %s2392_s14, %s2388_s13 }
  0x4a   : > { %p63_p10 = scmp.eq.s32.totalorder %s2404_s16, 0  ;;  %p68_p12 = scmp.ne.s32.totalorder %s2388_s13, %s2384_s12 }
  0x4b   : > { %s2888_s10 = smov (%p48_p7, %s46_s10), 0  ;;  %p252_p4 = scmp.eq.s32.totalorder %s1828_s21, 1 }
  0x4c   : > { %2865 = sst [smem:[#allocation23_spill]] %s2888_s10  ;;  %p2577_p11 = por %p63_p10, %p62_p9 }
  0x4d   : > { %2038 = dma.hbm_to_vmem [thread:$0]  (!%p2519_p6), %s2864_s6, 512, %s311_s26, [#allocation14], %s2410_s27, %s2410_s27, %s2411_s28  }
  0x4e   : > { %s50_s27 = ssub.s32 %s2400_s0, %s2888_s10  ;;  %p246_p6 = scmp.eq.s32.totalorder %s2505_s17, 1 }
  0x4f   : > { %p53_p13 = scmp.eq.s32.totalorder %s50_s27, 0  ;;  %p2588_p0 = por %p2853_p1, %p68_p12 }
  0x50   : > { %p2592_p2 = por %p246_p6, %p62_p9  ;;  %p2599_p8 = por %p252_p4, %p68_p12 }
  0x51   : > { %s2597_s22 = scalar_select %p53_p13, %s2392_s14, %s55_s11  }
  0x52   : > { %p2054_p7 = scmp.lt.s32.totalorder %s2404_s16, 2  ;;  %s330_s23 = sand.u32 1, %s2392_s14  }
  0x53   : > { %s1836_s26 = sshll.u32 %s2400_s0, 7  ;;  %s1835_s29 = sshll.u32 %s330_s23, 3 }
  0x54   : > { %s2870_s1 = sld [smem:[#allocation24_spill]]  ;;  %s334_s3 = scalar_lea.vmem [#allocation4], %s1835_s29 }
  0x55   : > { %s342_s4 = sshll.u32 %s334_s3, 4  ;;  %p2611_p9 = pnand %p2054_p7, %p2577_p11  ;;  %s343_s4 = int_to_ptr.vmem [resolvable:$true] %s342_s4 }
  0x56   : > { %s2618_s6 = scalar_lea.hbm %s2844_s2, %s1836_s26  ;;  %s331_s10 = scalar_lea.sflag [#allocation5], %s330_s23 }
  0x57   : > { %p2252_p10 = pneg %p2611_p9  ;;  %s2263_s25 = scalar_lea.vmem %s343_s4, 128 }
  0x58   : > { %p2264_p12 = scmp.ne.s32.totalorder %s343_s4, %s2263_s25  ;;  %s2413_s3 = smov [#allocation4]  }
  0x59   : > { %s2268_s19 = sshll.u32 %s2413_s3, 4  ;;  %s2269_s19 = int_to_ptr.vmem [resolvable:$false] %s2268_s19 }
  0x5a   : > { %s340_s27 = scalar_lea.hbm %s2870_s1, %s1836_s26  ;;  %p2266_p6 = pnand %p2264_p12, %p2252_p10 }
  0x5b   : > { %s2270_s30 = scalar_lea.vmem %s2269_s19, 256  ;;  %p2271_p13 = scmp.lt.s32.totalorder %s343_s4, %s2269_s19 }
  0x5c   : > { %p2267_p11 = pneg %p2266_p6  ;;  %p2272_p4 = scmp.lt.s32.totalorder %s2270_s30, %s2263_s25 }
  0x5e   : > { %p2273_p7 = por %p2272_p4, %p2271_p13 }
  0x60   : > { %p2274_p5 = pnand %p2273_p7, %p2267_p11 }
  0x62   : > { %2277 = shalt.err (!%p2274_p5)
}
  0x63   : > { %2042 = dma.hbm_to_vmem [thread:$0]  (!%p2611_p9), %s340_s27, 128, %s343_s4, %s331_s10  }
  0x64   : > { %s349_s23 = sand.u32 1, %s2404_s16   ;;  %s353_s26 = scalar_lea.vmem [#allocation7], %s1835_s29 }
  0x65   : > { %s360_s21 = sshll.u32 %s353_s26, 4  ;;  %s350_s11 = scalar_lea.sflag [#allocation8], %s349_s23  ;;  %s361_s21 = int_to_ptr.vmem [resolvable:$true] %s360_s21 }
  0x66   : > { %s2291_s1 = scalar_lea.vmem %s361_s21, 128  ;;  %s2414_s25 = smov [#allocation7]  }
  0x67   : > { %p2292_p12 = scmp.ne.s32.totalorder %s361_s21, %s2291_s1  ;;  %s2296_s3 = sshll.u32 %s2414_s25, 4  ;;  %s2297_s3 = int_to_ptr.vmem [resolvable:$false] %s2296_s3 }
  0x68   : > { %s2298_s19 = scalar_lea.vmem %s2297_s3, 256  ;;  %p2299_p5 = scmp.lt.s32.totalorder %s361_s21, %s2297_s3 }
  0x69   : > { %p2294_p6 = pnand %p2292_p12, %p2252_p10  ;;  %p2300_p11 = scmp.lt.s32.totalorder %s2298_s19, %s2291_s1 }
  0x6b   : > { %p2295_p1 = pneg %p2294_p6  ;;  %p2301_p13 = por %p2300_p11, %p2299_p5 }
  0x6d   : > { %p2302_p4 = pnand %p2301_p13, %p2295_p1 }
  0x6f   : > { %2305 = shalt.err (!%p2302_p4)
}
  0x70   : > { %2045 = dma.hbm_to_vmem [thread:$0]  (!%p2611_p9), %s2618_s6, 128, %s361_s21, %s350_s11  }
  0x71   : > { %369 = sbr.rel (%p2510_p3) target bundleno = 2748 (0xabc), region = 52  ;;  %s2637_s4 = sand.u32 (!%p2510_p3), 1, %s2388_s13  }
  0x72   : > { %s2640_s10 = sshll.u32 (!%p2510_p3), %s2637_s4, 3  ;;  %s372_s1 = scalar_lea.sflag (!%p2510_p3), [#allocation5], %s2637_s4 }
  0x73   : > { %s375_s29 = scalar_lea.vmem (!%p2510_p3), [#allocation4], %s2640_s10 }
  0x76   : > { %2359 = dma.done.wait (%p2588_p0), %s372_s1, 128  }
  0x77   : > { %2361 = vsyncadd (%p2588_p0), %s372_s1, 4294967168  ;;  %s380_s5 = sand.u32 1, %s2505_s17   ;;  %s384_s18 = scalar_lea.vmem [#allocation7], %s2640_s10 }
  0x78   : > { %s381_s6 = scalar_lea.sflag [#allocation8], %s380_s5 }
  0x79   : > { %2363 = dma.done.wait (%p2588_p0), %s381_s6, 128  }
  0x7a   : > { %2365 = vsyncadd (%p2588_p0), %s381_s6, 4294967168  ;;  %p2872_p1 = scmp.eq.s32.totalorder %s2505_s17, 0 }
  0x7c   : > { %2367 = dma.done.wait (%p2872_p1), [#allocation8], 512   ;;  %p2873_p3 = pmov %p2872_p1 }
  0x7d   : > { %p2874_p9 = pmov %p2872_p1 }
  0x7e   : > { %2369 = vsyncadd (%p2873_p3), [#allocation8], 4294966784 }
  0x7f   : > { %2371 = dma.done.wait (%p2874_p9), [#allocation11], 1024   ;;  %p2875_p10 = pmov %p2872_p1 }
  0x80   : > { %p2876_p7 = pmov %p2872_p1 }
  0x81   : > { %2373 = vsyncadd (%p2875_p10), [#allocation11], 4294966272 }
  0x82   : > { %2375 = dma.done.wait (%p2876_p7), [#allocation14], 512   ;;  %p2877_p12 = pmov %p2872_p1 }
  0x83   : > { %v2415_v0 = vmov 0.0   ;;  %vm2416_vm0 = vmmov 0   ;;  %v522_v1 = vld [vmem:[#allocation10 + $0x18] sm:$0xff]  ;;  %v521_v3 = vld [vmem:[#allocation10 + $0x10] sm:$0xff]  ;;  %v520_v5 = vld [vmem:[#allocation10 + $0x8] sm:$0xff]  ;;  %vm445_vm1 = vcmask 261120   ;;  %v674_v23 = vlaneseq }
  0x84   : > { %2377 = vsyncadd (%p2877_p12), [#allocation14], 4294966784  ;;  %1922 = vmatprep.subr.mxu1 %v2415_v0  ;;  %1911 = vmatprep.subr.mxu0 %v2415_v0  ;;  %v444_v2 = vld [vmem:[#allocation9 + $0x18] sm:$0xff]  ;;  %v443_v4 = vld [vmem:[#allocation9 + $0x10] sm:$0xff]  ;;  %vm678_vm2 = vcmask 64512   ;;  %s2417_s17 = smov 120  }
  0x85   : > { %1930 = vmatprep.mubr.msk.f32.mxu1 %vm2416_vm0, %v2415_v0  ;;  %1919 = vmatprep.mubr.msk.f32.mxu0 %vm2416_vm0, %v2415_v0  ;;  %v442_v6 = vld [vmem:[#allocation9 + $0x8] sm:$0xff]  ;;  %v519_v7 = vld [vmem:[#allocation10] sm:$0xff]  ;;  %v440_v9 = vld [vmem:[%s384_s18] sm:$0xff]  ;;  %s438_s28 = sld [smem:[#allocation3 + %s2396_s15]]  ;;  %v675_v24 = vand.u32 127, %v674_v23  ;;  %s2418_s27 = smov 112  }
  0x86   : > { %1923 = vmatpush3.msra.mxu1 %v522_v1  ;;  %1912 = vmatpush3.msra.mxu0 %v444_v2  ;;  %v441_v8 = vld [vmem:[#allocation9] sm:$0xff]  ;;  %v599_v11 = vld [vmem:[#allocation12 + $0x18] sm:$0xff]  ;;  %v598_v12 = vld [vmem:[#allocation12 + $0x10] sm:$0xff]  ;;  %s2419_s30 = smov 104   ;;  %s1869_s25 = sshll.u32 %s2396_s15, 7 }
  0x87   : > { %1924 = vmatprep.subr.mxu1 %v2415_v0  ;;  %1913 = vmatprep.subr.mxu0 %v2415_v0  ;;  %v2680_v10 = vld [vmem:[%s375_s29] sm:$0xff]  ;;  %s437_s3 = scalar_lea.vmem [#allocation15], %s2640_s10  ;;  %s1684_s5 = scalar_lea.hbm %s2851_s9, %s1869_s25 }
  0x88   : > { %1925 = vmatpush3.msra.mxu1 %v521_v3  ;;  %1914 = vmatpush3.msra.mxu0 %v443_v4  ;;  %v597_v13 = vld [vmem:[#allocation12 + $0x8] sm:$0xff]  ;;  %v596_v14 = vld [vmem:[#allocation12] sm:$0xff]  ;;  %s1686_s19 = sshll.u32 %s437_s3, 4  ;;  %s1672_s6 = scalar_lea.sflag [#allocation6], %s2637_s4  ;;  %s1687_s19 = int_to_ptr.vmem [resolvable:$true] %s1686_s19 }
  0x89   : > { %1926 = vmatprep.subr.mxu1 %v2415_v0  ;;  %1915 = vmatprep.subr.mxu0 %v2415_v0  ;;  %v671_v50 = vld [vmem:[#allocation13 + $0x8] sm:$0xff]  ;;  %v670_v55 = vld [vmem:[#allocation13] sm:$0xff]  ;;  %s2306_s18 = scalar_lea.vmem %s1687_s19, 128 }
  0x8a   : > { %1927 = vmatpush3.msra.mxu1 %v520_v5  ;;  %1916 = vmatpush3.msra.mxu0 %v442_v6  ;;  %p2307_p0 = scmp.ne.s32.totalorder %s1687_s19, %s2306_s18 }
  0x8b   : > { %1928 = vmatprep.subr.mxu1 %v2415_v0  ;;  %1917 = vmatprep.subr.mxu0 %v2415_v0  ;;  %v676_v25 = vstv %s438_s28 }
  0x8c   : > { %1929 = vmatpush3.msra.mxu1 %v519_v7  ;;  %1918 = vmatpush3.msra.mxu0 %v441_v8  ;;  %vm2725_vm3 = vcmp.lt.s32.totalorder %v675_v24, %v676_v25  ;;  %p2308_p6 = pnand %p2307_p0, %p2592_p2 }
  0x8d   : > { %1931 = vmatmul.mubr.msk.f32.vlgmr.msra.gmra.mxu1 %vm445_vm1, %v440_v9  ;;  %1920 = vmatmul.mubr.msk.f32.vlgmr.msra.gmra.mxu0 %vm445_vm1, %v2680_v10 }
  0x8e   : > { %1944 = vmatprep.subr.mxu1 %v2415_v0  ;;  %1946 = vmatprep.mubr.msk.f32.mxu1 %vm2416_vm0, %v2415_v0  ;;  %p2309_p5 = pneg %p2308_p6 }
  0x8f   : > { %1933 = vmatprep.subr.mxu0 %v2415_v0  ;;  %1941 = vmatprep.mubr.msk.f32.mxu0 %vm2416_vm0, %v2415_v0 }
  0x90   : > { %1934 = vmatpush3.msra.mxu0 %v599_v11 }
  0x91   : > { %1935 = vmatprep.subr.mxu0 %v2415_v0 }
  0x92   : > { %1936 = vmatpush3.msra.mxu0 %v598_v12 }
  0x93   : > { %1937 = vmatprep.subr.mxu0 %v2415_v0 }
  0x94   : > { %1938 = vmatpush3.msra.mxu0 %v597_v13 }
  0x95   : > { %1939 = vmatprep.subr.mxu0 %v2415_v0 }
  0x96   : > { %1940 = vmatpush3.msra.mxu0 %v596_v14 }
  0x97   : > { %1942 = vmatmul.mubr.msk.f32.vlgmr.msra.gmra.mxu0 %vm445_vm1, %v440_v9  ;;  %1954 = vmatprep.subr.mxu0 %v2415_v0 }
  0x98   : > { %1956 = vmatprep.mubr.msk.f32.mxu0 %vm2416_vm0, %v2415_v0 }
 0x14d   : > { %v2700_v15 = vpop.f32.mrf.mxu1  ;;  %v2702_v16 = vpop.f32.mrf.mxu0 }
 0x14e   : > { %843 = vrot.lane.b32.xlu0 %v2700_v15, %s2417_s17  ;;  %1945 = vmatpush3.xpose.msk.msra.mxu1 %vm678_vm2, %v2700_v15 }
 0x14f   : > { %v1932_v17 = vpop.f32.mrf.mxu1  ;;  %v1921_v18 = vpop.f32.mrf.mxu0  ;;  %1949 = vmatprep.subr.mxu1 %v2415_v0 }
 0x151   : > { %1947 = vmatmul.mubr.msk.f32.vlgmr.msra.gmra.mxu1 %vm678_vm2, %v2702_v16 }
 0x152   : > { %841 = vrot.lane.b32.xlu0 %v2702_v16, %s2417_s17  ;;  %1951 = vmatprep.mubr.msk.f32.mxu1 %vm2416_vm0, %v2415_v0 }
 0x157   : > { %v2715_v19 = vpop.f32.mrf.mxu0 }
 0x158   : > { %1950 = vmatpush3.msra.mxu1 %v2715_v19 }
 0x159   : > { %v1943_v20 = vpop.f32.mrf.mxu0  ;;  %1959 = vmatprep.subr.mxu1 %v2415_v0 }
 0x1c0   : > { %v844_v21 = vpop.permute.xlu0 %843 }
 0x1c1   : > { %1955 = vmatpush3.xpose.msk.msra.mxu0 %vm678_vm2, %v844_v21 }
 0x1c2   : > { %1964 = vmatprep.subr.mxu0 %v2415_v0 }
 0x1c4   : > { %v842_v22 = vpop.permute.xlu0 %841 }
 0x1c5   : > { %1957 = vmatmul.mubr.msk.f32.vlgmr.msra.gmra.mxu0 %vm678_vm2, %v842_v22 }
 0x1c6   : > { %1966 = vmatprep.mubr.msk.f32.mxu0 %vm2416_vm0, %v2415_v0  ;;  %1965 = vmatpush3.msra.mxu0 %v671_v50 }
 0x1c7   : > { %1974 = vmatprep.subr.mxu0 %v2415_v0 }
 0x211   : > { %v751_v26 = vpop.f32.mrf.mxu1 }
 0x212   : > { %v755_v28 = vmul.f32 0.35355338, %v751_v26 }
 0x213   : > { %v1948_v29 = vpop.f32.mrf.mxu1 }
 0x214   : > { %v756_v30 = vsel %vm2725_vm3, %v755_v28, -1000000.0 }
 0x215   : > { %v757_v31 = vsel %vm678_vm2, %v756_v30, -inf }
 0x216   : > { %758 = vmax.xlane.f32.xlu1 %v757_v31 }
 0x285   : > { %v915_v32 = vpop.f32.mrf.mxu0 }
 0x286   : > { %v919_v33 = vmul.f32 0.35355338, %v915_v32 }
 0x287   : > { %v1958_v34 = vpop.f32.mrf.mxu0 }
 0x288   : > { %v920_v35 = vsel %vm2725_vm3, %v919_v33, -1000000.0 }
 0x289   : > { %v921_v36 = vsel %vm678_vm2, %v920_v35, -inf }
 0x28a   : > { %922 = vmax.xlane.f32.xlu1 %v921_v36 }
 0x29f   : > { %v759_v37 = vpop.xlane.xlu1 %758 }
 0x2a0   : > { %v760_v38 = vsub.f32 %v756_v30, %v759_v37 }
 0x2a2   : > { %v761_v39 = vmul.f32 1.442695, %v760_v38 }
 0x2a4   : > { %2120 = vpow2.f32 %v761_v39 }
 0x2b1   : > { %v2121_v40 = vpop.eup %2120 }
 0x2b2   : > { %v763_v41 = vsel %vm678_vm2, %v2121_v40, 0.0 }
 0x2b3   : > { %764 = vadd.xlane.f32.xlu0 %v763_v41 }
 0x2c9   : > { %1246 = vrot.lane.b32.xlu0 %v2715_v19, %s2418_s27 }
 0x313   : > { %v923_v42 = vpop.xlane.xlu1 %922 }
 0x314   : > { %v924_v43 = vsub.f32 %v920_v35, %v923_v42  ;;  %v673_v35 = vld [vmem:[#allocation13 + $0x18] sm:$0xff] }
 0x316   : > { %v925_v44 = vmul.f32 1.442695, %v924_v43 }
 0x318   : > { %2122 = vpow2.f32 %v925_v44 }
 0x325   : > { %v2123_v45 = vpop.eup %2122 }
 0x326   : > { %v927_v46 = vsel %vm678_vm2, %v2123_v45, 0.0 }
 0x327   : > { %928 = vadd.xlane.f32.xlu1 %v927_v46 }
 0x338   : > { %933 = vrot.lane.b32.xlu1 %v2715_v19, %s2417_s17  ;;  %s2420_s17 = smov [#allocation15]  }
 0x339   : > { %s2310_s28 = sshll.u32 %s2420_s17, 4  ;;  %s2311_s28 = int_to_ptr.vmem [resolvable:$false] %s2310_s28 }
 0x33a   : > { %s2312_s15 = scalar_lea.vmem %s2311_s28, 256  ;;  %p2313_p11 = scmp.lt.s32.totalorder %s1687_s19, %s2311_s28 }
 0x33b   : > { %p2314_p13 = scmp.lt.s32.totalorder %s2312_s15, %s2306_s18 }
 0x33c   : > { %v765_v47 = vpop.xlane.xlu0 %764  ;;  %1157 = vrot.lane.b32.xlu1 %v2700_v15, %s2418_s27 }
 0x33d   : > { %2124 = vrcp.f32 %v765_v47  ;;  %p2315_p4 = por %p2314_p13, %p2313_p11 }
 0x33f   : > { %p2316_p1 = pnand %p2315_p4, %p2309_p5 }
 0x340   : > { %1155 = vrot.lane.b32.xlu1 %v2702_v16, %s2418_s27  ;;  %v1247_v57 = vpop.permute.xlu0 %1246 }
 0x34a   : > { %v2125_v48 = vpop.eup %2124 }
 0x34b   : > { %v767_v49 = vmul.f32 %v2125_v48, %v2121_v40 }
 0x34d   : > { %1952 = vmatmul.mubr.msk.f32.vlgmr.msra.gmra.mxu1 %vm678_vm2, %v767_v49 }
 0x34e   : > { %1961 = vmatprep.mubr.msk.f32.mxu1 %vm2416_vm0, %v2415_v0 }
 0x3b0   : > { %v929_v51 = vpop.xlane.xlu1 %928 }
 0x3b1   : > { %2126 = vrcp.f32 %v929_v51 }
 0x3b4   : > { %v934_v52 = vpop.permute.xlu1 %933 }
 0x3b5   : > { %1960 = vmatpush3.msra.mxu1 %v934_v52 }
 0x3b6   : > { %1969 = vmatprep.subr.mxu1 %v2415_v0 }
 0x3b8   : > { %v1158_v59 = vpop.permute.xlu1 %1157 }
 0x3bc   : > { %v1156_v62 = vpop.permute.xlu1 %1155 }
 0x3be   : > { %v2127_v53 = vpop.eup %2126 }
 0x3bf   : > { %v931_v54 = vmul.f32 %v2127_v53, %v2123_v45 }
 0x3c1   : > { %1962 = vmatmul.mubr.msk.f32.vlgmr.msra.gmra.mxu1 %vm678_vm2, %v931_v54 }
 0x3c2   : > { %1970 = vmatpush3.msra.mxu1 %v670_v55  ;;  %1971 = vmatprep.mubr.msk.f32.mxu1 %vm2416_vm0, %v2415_v0 }
 0x3c3   : > { %1979 = vmatprep.subr.mxu1 %v2415_v0 }
 0x40d   : > { %v837_v56 = vpop.f32.mrf.mxu1 }
 0x40e   : > { %1972 = vmatmul.mubr.msk.f32.vlgmr.msra.gmra.mxu1 %vm678_vm2, %v837_v56 }
 0x40f   : > { %1980 = vmatpush3.msra.mxu1 %v1247_v57  ;;  %v1953_v58 = vpop.f32.mrf.mxu1  ;;  %1981 = vmatprep.mubr.msk.f32.mxu1 %vm2416_vm0, %v2415_v0 }
 0x410   : > { %1989 = vmatprep.subr.mxu1 %v2415_v0  ;;  %v1866_v58 = vld [vmem:[%s2849_s7] ss:$0 sm:$0xff] }
 0x481   : > { %v1005_v60 = vpop.f32.mrf.mxu1 }
 0x482   : > { %1967 = vmatmul.mubr.msk.f32.vlgmr.msra.gmra.mxu0 %vm678_vm2, %v1005_v60  ;;  %v1867_v60 = vld [vmem:[%s2850_s8] ss:$0 sm:$0xff] }
 0x483   : > { %1975 = vmatpush3.xpose.msk.msra.mxu0 %vm678_vm2, %v1158_v59  ;;  %v1963_v61 = vpop.f32.mrf.mxu1  ;;  %1976 = vmatprep.mubr.msk.f32.mxu0 %vm2416_vm0, %v2415_v0 }
 0x484   : > { %1984 = vmatprep.subr.mxu0 %v2415_v0 }
 0x486   : > { %1977 = vmatmul.mubr.msk.f32.vlgmr.msra.gmra.mxu0 %vm678_vm2, %v1156_v62 }
 0x487   : > { %1986 = vmatprep.mubr.msk.f32.mxu0 %vm2416_vm0, %v2415_v0 }
 0x4ce   : > { %v1151_v63 = vpop.f32.mrf.mxu1 }
 0x4d0   : > { %v1973_v1 = vpop.f32.mrf.mxu1 }
 0x542   : > { %v1078_v2 = vpop.f32.mrf.mxu0 }
 0x544   : > { %v1968_v3 = vpop.f32.mrf.mxu0 }
 0x546   : > { %v1229_v4 = vpop.f32.mrf.mxu0 }
 0x547   : > { %v1233_v5 = vmul.f32 0.35355338, %v1229_v4 }
 0x548   : > { %v1978_v6 = vpop.f32.mrf.mxu0 }
 0x549   : > { %v1234_v7 = vsel %vm2725_vm3, %v1233_v5, -1000000.0 }
 0x54a   : > { %v1235_v8 = vsel %vm678_vm2, %v1234_v7, -inf }
 0x54b   : > { %1236 = vmax.xlane.f32.xlu1 %v1235_v8 }
 0x5d4   : > { %v1237_v9 = vpop.xlane.xlu1 %1236 }
 0x5d5   : > { %v1238_v11 = vsub.f32 %v1234_v7, %v1237_v9 }
 0x5d7   : > { %v1239_v12 = vmul.f32 1.442695, %v1238_v11 }
 0x5d9   : > { %2128 = vpow2.f32 %v1239_v12 }
 0x5e6   : > { %v2129_v13 = vpop.eup %2128 }
 0x5e7   : > { %v1241_v14 = vsel %vm678_vm2, %v2129_v13, 0.0 }
 0x5e8   : > { %1242 = vadd.xlane.f32.xlu0 %v1241_v14 }
 0x5fe   : > { %1398 = vrot.lane.b32.xlu0 %v2700_v15, %s2419_s30  ;;  %v672_v15 = vld [vmem:[#allocation13 + $0x10] sm:$0xff] }
 0x5ff   : > { %1985 = vmatpush3.msra.mxu0 %v672_v15 }
 0x600   : > { %1994 = vmatprep.subr.mxu0 %v2415_v0 }
 0x602   : > { %1396 = vrot.lane.b32.xlu0 %v2702_v16, %s2419_s30 }
 0x671   : > { %v1243_v17 = vpop.xlane.xlu0 %1242 }
 0x672   : > { %2130 = vrcp.f32 %v1243_v17 }
 0x675   : > { %v1399_v20 = vpop.permute.xlu0 %1398 }
 0x679   : > { %v1397_v22 = vpop.permute.xlu0 %1396 }
 0x67f   : > { %v2131_v18 = vpop.eup %2130 }
 0x680   : > { %v1245_v21 = vmul.f32 %v2131_v18, %v2129_v13 }
 0x682   : > { %1982 = vmatmul.mubr.msk.f32.vlgmr.msra.gmra.mxu1 %vm678_vm2, %v1245_v21 }
 0x683   : > { %1990 = vmatpush3.xpose.msk.msra.mxu1 %vm678_vm2, %v1399_v20  ;;  %1991 = vmatprep.mubr.msk.f32.mxu1 %vm2416_vm0, %v2415_v0 }
 0x684   : > { %1999 = vmatprep.subr.mxu1 %v2415_v0 }
 0x686   : > { %1992 = vmatmul.mubr.msk.f32.vlgmr.msra.gmra.mxu1 %vm678_vm2, %v1397_v22 }
 0x687   : > { %2001 = vmatprep.mubr.msk.f32.mxu1 %vm2416_vm0, %v2415_v0  ;;  %2000 = vmatpush3.msra.mxu1 %v673_v35 }
 0x742   : > { %v1318_v16 = vpop.f32.mrf.mxu1 }
 0x743   : > { %1987 = vmatmul.mubr.msk.f32.vlgmr.msra.gmra.mxu0 %vm678_vm2, %v1318_v16 }
 0x744   : > { %v1983_v23 = vpop.f32.mrf.mxu1  ;;  %1996 = vmatprep.mubr.msk.f32.mxu0 %vm2416_vm0, %v2415_v0  ;;  %v1152_v0 = vadd.f32 %v1151_v63, %v1078_v2 }
 0x746   : > { %v1470_v24 = vpop.f32.mrf.mxu1 }
 0x747   : > { %v1474_v25 = vmul.f32 0.35355338, %v1470_v24 }
 0x748   : > { %v1993_v26 = vpop.f32.mrf.mxu1 }
 0x749   : > { %v1475_v28 = vsel %vm2725_vm3, %v1474_v25, -1000000.0 }
 0x74a   : > { %v1476_v29 = vsel %vm678_vm2, %v1475_v28, -inf }
 0x74b   : > { %1477 = vmax.xlane.f32.xlu0 %v1476_v29 }
 0x7d4   : > { %v1478_v30 = vpop.xlane.xlu0 %1477 }
 0x7d5   : > { %v1479_v31 = vsub.f32 %v1475_v28, %v1478_v30 }
 0x7d7   : > { %v1480_v32 = vmul.f32 1.442695, %v1479_v31 }
 0x7d9   : > { %2132 = vpow2.f32 %v1480_v32 }
 0x7e6   : > { %v2133_v33 = vpop.eup %2132 }
 0x7e7   : > { %v1482_v34 = vsel %vm678_vm2, %v2133_v33, 0.0 }
 0x7e8   : > { %1483 = vadd.xlane.f32.xlu1 %v1482_v34 }
 0x7f9   : > { %1487 = vrot.lane.b32.xlu1 %v2715_v19, %s2419_s30 }
 0x803   : > { %v1391_v36 = vpop.f32.mrf.mxu0 }
 0x804   : > { %v1395_v27 = vadd.f32 %v1391_v36, %v1152_v0 }
 0x805   : > { %v1988_v37 = vpop.f32.mrf.mxu0 }
 0x871   : > { %v1484_v38 = vpop.xlane.xlu1 %1483 }
 0x872   : > { %2134 = vrcp.f32 %v1484_v38 }
 0x875   : > { %v1488_v39 = vpop.permute.xlu1 %1487 }
 0x876   : > { %1995 = vmatpush3.msra.mxu0 %v1488_v39 }
 0x87f   : > { %v2135_v40 = vpop.eup %2134 }
 0x880   : > { %v1486_v41 = vmul.f32 %v2135_v40, %v2133_v33 }
 0x882   : > { %1997 = vmatmul.mubr.msk.f32.vlgmr.msra.gmra.mxu0 %vm678_vm2, %v1486_v41 }
 0x942   : > { %v1559_v42 = vpop.f32.mrf.mxu0 }
 0x943   : > { %2002 = vmatmul.mubr.msk.f32.vlgmr.msra.gmra.mxu1 %vm678_vm2, %v1559_v42 }
 0x944   : > { %v1998_v43 = vpop.f32.mrf.mxu0 }
 0xa03   : > { %v1632_v44 = vpop.f32.mrf.mxu1 }
 0xa04   : > { %v1636_v19 = vadd.f32 %v1632_v44, %v1395_v27 }
 0xa05   : > { %v2003_v45 = vpop.f32.mrf.mxu1 }
 0xa06   : > { %v1637_v46 = vadd.f32 %v1636_v19, %v2680_v10 }
 0xa08   : > { %v1640_v47 = vsel %vm445_vm1, %v1637_v46, 0.0  ;;  %v1645_v48 = vmul.f32 %v1637_v46, %v1637_v46 }
 0xa09   : > { %1641 = vadd.xlane.f32.xlu1 %v1640_v47 }
 0xa0a   : > { %v1646_v49 = vsel %vm445_vm1, %v1645_v48, 0.0 }
 0xa0b   : > { %1647 = vadd.xlane.f32.xlu0 %v1646_v49 }
 0xa92   : > { %v1642_v50 = vpop.xlane.xlu1 %1641 }
 0xa93   : > { %v1644_v51 = vmul.f32 0.03125, %v1642_v50 }
 0xa94   : > { %v1648_v52 = vpop.xlane.xlu0 %1647 }
 0xa95   : > { %v1650_v53 = vmul.f32 %v1644_v51, %v1644_v51  ;;  %v1649_v54 = vmul.f32 0.03125, %v1648_v52  ;;  %v1654_v57 = vsub.f32 %v1637_v46, %v1644_v51 }
 0xa97   : > { %v1651_v55 = vsub.f32 %v1649_v54, %v1650_v53 }
 0xa99   : > { %v1652_v56 = vadd.f32 1e-05, %v1651_v55 }
 0xa9b   : > { %2136 = vrsqrt.f32 %v1652_v56 }
 0xaa8   : > { %v2137_v10 = vpop.eup %2136 }
 0xaa9   : > { %v1655_v59 = vmul.f32 %v2137_v10, %v1654_v57 }
 0xaab   : > { %v1662_v61 = vmul.f32 %v1866_v58, %v1655_v59 }
 0xaad   : > { %v1669_v62 = vadd.f32 %v1867_v60, %v1662_v61 }
 0xaaf   : > { %1670 = vst.msk [vmem:[%s437_s3] sm:$0xff] %vm445_vm1, %v1669_v62 }
 0xab0   : > { %2319 = shalt.err (!%p2316_p1)
}
 0xab1   : > { %s2320_s10 = scalar_lea.hbm %s1684_s5, 128  ;;  %s2324_s30 = scalar_lea.hbm %s2851_s9, 256 }
 0xab2   : > { %p2321_p3 = scmp.ne.s32.totalorder %s1684_s5, %s2320_s10  ;;  %p2325_p7 = scmp.lt.s32.totalorder %s1684_s5, %s2851_s9 }
 0xab3   : > { %p2326_p12 = scmp.lt.s32.totalorder %s2324_s30, %s2320_s10 }
 0xab4   : > { %p2322_p9 = pnand %p2321_p3, %p2592_p2 }
 0xab5   : > { %p2327_p0 = por %p2326_p12, %p2325_p7 }
 0xab6   : > { %p2323_p10 = pneg %p2322_p9 }
 0xab8   : > { %p2328_p6 = pnand %p2327_p0, %p2323_p10 }
 0xaba   : > { %2331 = shalt.err (!%p2328_p6)
}
 0xabb   : > { %2024 = dma.vmem_to_hbm [thread:$0]  (%p2592_p2), %s1687_s19, 128, %s1684_s5, %s1672_s6  }
 0xabc PF: > { %s1698_s21 = sand.u32 1, %s2384_s12   ;;  %p2880_p5 = scmp.ge.s32.totalorder %s2404_s16, 2 }
 0xabd   : > { %s1699_s11 = scalar_lea.sflag [#allocation6], %s1698_s21 }
 0xabe   : > { %p2047_p11 = pnand %p2880_p5, %p2599_p8 }
 0xac0   : > { %p2048_p13 = pneg %p2047_p11 }
 0xac2   : > { %2379 = dma.done.wait (%p2048_p13), %s1699_s11, 128  }
 0xac3   : > { %2381 = vsyncadd (%p2048_p13), %s1699_s11, 4294967168  ;;  %s34_s16 = sadd.s32 1, %s2404_s16   ;;  %s2881_s20 = sld [smem:[#allocation23_spill]] }
 0xac4   : > { %p31_p4 = scmp.ge.s32.totalorder %s34_s16, 4   ;;  %s2882_s12 = smov %s2388_s13 }
 0xac5   : > { %s2883_s13 = smov %s2392_s14  ;;  %s2884_s14 = smov %s2597_s22 }
 0xac6   : > { %s2885_s15 = smov %s2400_s0  ;;  %33 = sbr.rel (!%p31_p4) target bundleno = 20 (0x14), region = 126 }
 0xac9   : > { %s2886_s0 = smov %s2881_s20 }
 0xacb   :  { %1704 = vsyncpa [#allocation5], 1 }
 0xacc   :  { %1706 = vsyncpa [#allocation5 + $0x1], 1 }
 0xacd   :  { %1707 = vsyncpa [#allocation8], 1 }
 0xace   :  { %1709 = vsyncpa [#allocation8 + $0x1], 1 }
 0xacf   :  { %1710 = vsyncpa [#allocation11], 1 }
 0xad0   :  { %1711 = vsyncpa [#allocation14], 1 }
 0xad1   :  { %1712 = vsyncpa [#allocation6], 1 }
 0xad2   :  { %1714 = vsyncpa [#allocation6 + $0x1], 1 }

</bundles_post_ra>
